<compile_context>
chip_gen: v7x
topology: tpu7x:2x2x1
jax: 0.10.0
libtpu: 0.0.40
codegen_flags: <defaults>
</compile_context>

<pallas_src>
import jax
import jax.numpy as jnp
from jax.experimental import pallas as pl
from jax.experimental.pallas import tpu as pltpu


def _policy_kernel(x_ref, w_ref, b_ref, y_ref):
    x = x_ref[...]            # (TB, H)   float32, streamed batch tile
    w = w_ref[...]            # (2A, H)   float32, VMEM-resident across tiles
    b = b_ref[...]            # (2A, 1)   float32, VMEM-resident

    # (2A, TB) = w · x^T  — contract H of both operands on the MXU; batch lands
    # on the lane axis of the result (lane-dense epilogue + stores).
    out = jax.lax.dot_general(
        w, x,
        dimension_numbers=(((1,), (1,)), ((), ())),
        preferred_element_type=jnp.float32,
    ) + b                                                     # lane-broadcast bias

    A = y_ref.shape[0] // 2
    row = jax.lax.broadcasted_iota(jnp.int32, out.shape, 0)   # sublane index

    # mu = tanh(out) on rows [0, A)
    mu = jnp.tanh(out)
    # std = clip(softplus(out), 1e-6, 5) on rows [A, 2A)
    # numerically stable softplus: max(z, 0) + log1p(exp(-|z|))
    sp = jnp.maximum(out, 0.0) + jnp.log1p(jnp.exp(-jnp.abs(out)))
    std = jnp.clip(sp, 1e-6, 5.0)

    # Single lane-dense, unmasked store.
    y_ref[...] = jnp.where(row < A, mu, std)


def _round_up(x, m):
    return -(-x // m) * m


def continuous_policy_forward(x, w, b, *, block_b=4096):
    """x: (B, H), w: (2A, H) (native nn.Linear weight layout), b: (2A,).

    Returns (mu, std): the parameters of the Normal distribution the PyTorch
    module would construct.
    """
    x = x.astype(jnp.float32)
    w = w.astype(jnp.float32)
    B, H = x.shape
    twoA = w.shape[0]
    A = twoA // 2
    b2 = b.reshape(twoA, 1).astype(jnp.float32)

    # Tile selection: fewest evenly-sized 128-aligned batch tiles (lane dim of
    # the transposed output), minimizing padding.  (For v7x one could further
    # force an even tile count so both TensorCores get equal work.)
    block_b = max(128, int(block_b))
    n_tiles = max(1, -(-B // block_b))
    tb = _round_up(-(-B // n_tiles), 128)
    b_pad = _round_up(B, tb)
    n_tiles = b_pad // tb

    if b_pad != B:
        x = jnp.pad(x, ((0, b_pad - B), (0, 0)))

    y_t = pl.pallas_call(
        _policy_kernel,
        out_shape=jax.ShapeDtypeStruct((twoA, b_pad), jnp.float32),
        grid=(n_tiles,),
        in_specs=[
            pl.BlockSpec((tb, H), lambda i: (i, 0)),       # streamed batch tiles
            pl.BlockSpec((twoA, H), lambda i: (0, 0)),     # weight stays resident
            pl.BlockSpec((twoA, 1), lambda i: (0, 0)),     # bias stays resident
        ],
        out_specs=pl.BlockSpec((twoA, tb), lambda i: (0, i)),  # (2A, TB): batch on lanes
        compiler_params=pltpu.CompilerParams(
            dimension_semantics=(pltpu.PARALLEL,),         # shard tiles across TCs on v7x
        ),
    )(x, w, b2)

    # Tiny XLA slices/transposes back to the module's (B, A) layout.
    mu = y_t[:A, :B].T
    std = y_t[A:, :B].T
    return mu, std


def reference_forward(x, w, b):
    out = x @ w.T + b[None, :]
    A = w.shape[0] // 2
    mu = jnp.tanh(out[:, :A])
    std = jnp.clip(jax.nn.softplus(out[:, A:]), 1e-6, 5.0)
    return mu, std


if __name__ == "__main__":
    key = jax.random.PRNGKey(0)
    k_x, k_w, k_b, k_x2 = jax.random.split(key, 4)

    batch = 2
    hidden_size = 32
    action_num = 4

    # Deterministic "parameter init" mimicking nn.Linear's uniform(-1/sqrt(H), 1/sqrt(H)).
    bound = 1.0 / jnp.sqrt(jnp.float32(hidden_size))
    w = jax.random.uniform(k_w, (2 * action_num, hidden_size),
                           minval=-bound, maxval=bound, dtype=jnp.float32)
    b = jax.random.uniform(k_b, (2 * action_num,),
                           minval=-bound, maxval=bound, dtype=jnp.float32)

    x = jax.random.normal(k_x, (batch, hidden_size), dtype=jnp.float32)

    mu, std = continuous_policy_forward(x, w, b)
    jax.block_until_ready((mu, std))

    mu_ref, std_ref = reference_forward(x, w, b)
    assert mu.shape == (batch, action_num) and std.shape == (batch, action_num)
    assert jnp.allclose(mu, mu_ref, atol=1e-5, rtol=1e-5)
    assert jnp.allclose(std, std_ref, atol=1e-5, rtol=1e-5)

    # Exercise the multi-tile path (padding + resident weights + PARALLEL batch axis).
    x_big = jax.random.normal(k_x2, (1040, hidden_size), dtype=jnp.float32)
    mu_b, std_b = continuous_policy_forward(x_big, w, b, block_b=512)
    jax.block_until_ready((mu_b, std_b))
    mu_br, std_br = reference_forward(x_big, w, b)
    assert jnp.allclose(mu_b, mu_br, atol=1e-5, rtol=1e-5)
    assert jnp.allclose(std_b, std_br, atol=1e-5, rtol=1e-5)

    # Normal(mu, std) is a torch.distributions object; we return its parameters
    # (mu, std), which fully determine it.
    print("KERNEL_OK")
</pallas_src>

<mosaic_0001>
module attributes {stable_mosaic.version = 11 : i64} {
  func.func @_policy_kernel(%arg0: i32, %arg1: memref<128x32xf32, #tpu.memory_space<vmem>>, %arg2: memref<8x32xf32, #tpu.memory_space<vmem>>, %arg3: memref<8x1xf32, #tpu.memory_space<vmem>>, %arg4: memref<8x128xf32, #tpu.memory_space<vmem>>) attributes {dimension_semantics = [#tpu.dimension_semantics<parallel>], iteration_bounds = array<i64: 1>, scalar_prefetch = 0 : i64, scratch_operands = 0 : i64, tpu.core_type = #tpu.core_type<tc>, window_params = [{transform_indices = @transform_0, window_bounds = array<i64: 128, 32>}, {pipeline_mode = #tpu.pipeline_mode<synchronous>, transform_indices = @transform_1, window_bounds = array<i64: 8, 32>}, {pipeline_mode = #tpu.pipeline_mode<synchronous>, transform_indices = @transform_2, window_bounds = array<i64: 8, 1>}, {transform_indices = @transform_3, window_bounds = array<i64: 8, 128>}]} {
    %c0 = arith.constant 0 : index
    %c0_0 = arith.constant 0 : index
    %0 = vector.load %arg1[%c0, %c0_0] : memref<128x32xf32, #tpu.memory_space<vmem>>, vector<128x32xf32>
    %c0_1 = arith.constant 0 : index
    %c0_2 = arith.constant 0 : index
    %1 = vector.load %arg2[%c0_1, %c0_2] : memref<8x32xf32, #tpu.memory_space<vmem>>, vector<8x32xf32>
    %c0_3 = arith.constant 0 : index
    %c0_4 = arith.constant 0 : index
    %2 = vector.load %arg3[%c0_3, %c0_4] : memref<8x1xf32, #tpu.memory_space<vmem>>, vector<8x1xf32>
    %cst = arith.constant dense<0.000000e+00> : vector<8x128xf32>
    %3 = tpu.matmul %1, %0, %cst {dimension_numbers = #tpu.dot_dimension_numbers<[1], [1], [0], [0], [0, 0, 1, 0], [], []>} : vector<8x32xf32>, vector<128x32xf32>, vector<8x128xf32> -> vector<8x128xf32>
    %4 = vector.broadcast %2 : vector<8x1xf32> to vector<8x128xf32>
    %5 = arith.addf %3, %4 : vector<8x128xf32>
    %6 = tpu.iota {dimensions = array<i32: 0>} : vector<8x128xi32>
    %7 = math.tanh %5 : vector<8x128xf32>
    %cst_5 = arith.constant 0.000000e+00 : f32
    %8 = vector.broadcast %cst_5 : f32 to vector<8x128xf32>
    %9 = arith.maximumf %5, %8 : vector<8x128xf32>
    %10 = math.absf %5 : vector<8x128xf32>
    %cst_6 = arith.constant 0.000000e+00 : f32
    %11 = vector.broadcast %cst_6 : f32 to vector<8x128xf32>
    %12 = arith.subf %11, %10 : vector<8x128xf32>
    %13 = math.exp %12 : vector<8x128xf32>
    %14 = math.log1p %13 : vector<8x128xf32>
    %15 = arith.addf %9, %14 : vector<8x128xf32>
    %cst_7 = arith.constant 9.99999997E-7 : f32
    %cst_8 = arith.constant 5.000000e+00 : f32
    %16 = vector.broadcast %cst_7 : f32 to vector<8x128xf32>
    %17 = arith.maximumf %16, %15 : vector<8x128xf32>
    %18 = vector.broadcast %cst_8 : f32 to vector<8x128xf32>
    %19 = arith.minimumf %18, %17 : vector<8x128xf32>
    %c4_i32 = arith.constant 4 : i32
    %20 = vector.broadcast %c4_i32 : i32 to vector<8x128xi32>
    %21 = arith.cmpi slt, %6, %20 : vector<8x128xi32>
    %22 = arith.select %21, %7, %19 : vector<8x128xi1>, vector<8x128xf32>
    %c0_9 = arith.constant 0 : index
    %c0_10 = arith.constant 0 : index
    %23 = vector.load %arg4[%c0_9, %c0_10] : memref<8x128xf32, #tpu.memory_space<vmem>>, vector<8x128xf32>
    tpu.vector_store %arg4[%c0_9, %c0_10], %22 {strides = array<i32>} : memref<8x128xf32, #tpu.memory_space<vmem>>, vector<8x128xf32>,
    return
  }
  func.func @transform_0(%arg0: i32) -> (i32, i32) {
    %c0_i32 = arith.constant 0 : i32
    %c0_i32_0 = arith.constant 0 : i32
    return %arg0, %c0_i32 : i32, i32
  }
  func.func @transform_1(%arg0: i32) -> (i32, i32) {
    %c0_i32 = arith.constant 0 : i32
    %c0_i32_0 = arith.constant 0 : i32
    %c0_i32_1 = arith.constant 0 : i32
    return %c0_i32, %c0_i32_0 : i32, i32
  }
  func.func @transform_2(%arg0: i32) -> (i32, i32) {
    %c0_i32 = arith.constant 0 : i32
    %c0_i32_0 = arith.constant 0 : i32
    %c0_i32_1 = arith.constant 0 : i32
    return %c0_i32, %c0_i32_0 : i32, i32
  }
  func.func @transform_3(%arg0: i32) -> (i32, i32) {
    %c0_i32 = arith.constant 0 : i32
    %c0_i32_0 = arith.constant 0 : i32
    return %c0_i32, %arg0 : i32, i32
  }
}

</mosaic_0001>

<bundles_post_ra>
// kernel: tpu_custom_call.1
= control target key start
LH: loop header
LB: loop body
LE: loop exit
PB: predicated region body
PF: predicated region fallthrough
CT: control target
= control target key end

     0   :  { %vm38_vm0 = vcmask 261120   ;;  %v334_v2 = vmov 0.0|0.0   ;;  %vm335_vm2 = vmmov 0   ;;  %v336_v5 = vmov 0.0   ;;  %s448_s0 = inlined_call_operand.vmem [shape: f32[128,32], index: 0, kind: input, shape index: {}]   ;;  %s449_s1 = inlined_call_operand.vmem [shape: f32[8,32], index: 1, kind: input, shape index: {}]   ;;  %s450_s2 = inlined_call_operand.vmem [shape: f32[8,1], index: 2, kind: input, shape index: {}]   ;;  %s451_s3 = inlined_call_operand.hbm [shape: f32[8,128], index: 3, kind: output, shape index: {}]  }
   0x1   :  { %v15_v0 = vld [vmem:[%s448_s0] sm:$0xff]  ;;  %v16_v1 = vld [vmem:[%s448_s0 + $0x8] sm:$0xff]  ;;  %266 = vmatprep.subr.bf16.mxu0 %v334_v2  ;;  %vm367_vm1 = vmpackc.low %vm38_vm0, %vm38_vm0  ;;  %263 = vmatprep.mubr.msk.f32.mxu0 %vm335_vm2, %v336_v5  ;;  %v337_v6 = vmov 0  }
   0x2   :  { %v267_v3 = vpack.c.bf16 %v16_v1, %v15_v0  ;;  %303 = vset.pattern.permute.xlu0 %v337_v6  ;;  %v17_v7 = vld [vmem:[%s448_s0 + $0x10] sm:$0xff]  ;;  %v18_v8 = vld [vmem:[%s448_s0 + $0x18] sm:$0xff]  ;;  %v32_v9 = vld [vmem:[%s450_s2] sm:$0xff] }
   0x4   :  { %269 = vmatpush3.bf16.xpose.msk.msra.mxu0 %vm367_vm1, %v267_v3 }
   0x5   :  { %270 = vmatprep.subr.bf16.mxu0 %v334_v2 }
   0x6   :  { %8 = vsyncpa [#allocation3], 0  ;;  %v271_v10 = vpack.c.bf16 %v18_v8, %v17_v7  ;;  %35 = vperm.xlu0 %303, %v32_v9   ;;  %v19_v11 = vld [vmem:[%s448_s0 + $0x20] sm:$0xff]  ;;  %v20_v12 = vld [vmem:[%s448_s0 + $0x28] sm:$0xff]  ;;  %v160_v42 = vlaneseq }
   0x7   :  { %v275_v13 = vpack.c.bf16 %v20_v12, %v19_v11  ;;  %v21_v14 = vld [vmem:[%s448_s0 + $0x30] sm:$0xff]  ;;  %v22_v15 = vld [vmem:[%s448_s0 + $0x38] sm:$0xff]  ;;  %v23_v17 = vld [vmem:[%s448_s0 + $0x40] sm:$0xff] }
   0x8   :  { %v279_v16 = vpack.c.bf16 %v22_v15, %v21_v14  ;;  %v24_v18 = vld [vmem:[%s448_s0 + $0x48] sm:$0xff]  ;;  %v25_v20 = vld [vmem:[%s448_s0 + $0x50] sm:$0xff]  ;;  %v26_v21 = vld [vmem:[%s448_s0 + $0x58] sm:$0xff]  ;;  %v161_v48 = vshrl.u32 %v160_v42, 7 }
   0x9   :  { %v283_v19 = vpack.c.bf16 %v24_v18, %v23_v17  ;;  %v287_v22 = vpack.c.bf16 %v26_v21, %v25_v20  ;;  %v27_v23 = vld [vmem:[%s448_s0 + $0x60] sm:$0xff]  ;;  %v28_v24 = vld [vmem:[%s448_s0 + $0x68] sm:$0xff]  ;;  %v29_v26 = vld [vmem:[%s448_s0 + $0x70] sm:$0xff] }
   0xa   :  { %v291_v25 = vpack.c.bf16 %v28_v24, %v27_v23  ;;  %v30_v27 = vld [vmem:[%s448_s0 + $0x78] sm:$0xff]  ;;  %v31_v29 = vld [vmem:[%s449_s1] sm:$0xff]  ;;  %s338_s0 = smov [#allocation2]   ;;  %vm180_vm4 = vcmp.lt.s32.totalorder %v161_v48, 4 }
   0xb   :  { %v295_v28 = vpack.c.bf16 %v30_v27, %v29_v26  ;;  %s189_s1 = sshll.u32 %s338_s0, 4  ;;  %s190_s1 = int_to_ptr.vmem [resolvable:$true] %s189_s1 }
   0xc   :  { %273 = vmatpush3.bf16.xpose.msk.msra.mxu0 %vm367_vm1, %v271_v10  ;;  %s310_s20 = scalar_lea.vmem %s190_s1, 128  ;;  %p315_p1 = scmp.lt.s32.totalorder %s190_s1, %s190_s1 }
   0xd   :  { %274 = vmatprep.subr.bf16.mxu0 %v334_v2  ;;  %p311_p0 = scmp.ne.s32.totalorder %s190_s1, %s310_s20  ;;  %p316_p2 = scmp.lt.s32.totalorder %s310_s20, %s310_s20 }
   0xf   :  { %p317_p3 = por %p316_p2, %p315_p1 }
  0x11   :  { %p318_p4 = pnand %p317_p3, %p311_p0 }
  0x14   :  { %277 = vmatpush3.bf16.xpose.msk.msra.mxu0 %vm367_vm1, %v275_v13 }
  0x15   :  { %278 = vmatprep.subr.bf16.mxu0 %v334_v2 }
  0x1c   :  { %281 = vmatpush3.bf16.xpose.msk.msra.mxu0 %vm367_vm1, %v279_v16 }
  0x1d   :  { %282 = vmatprep.subr.bf16.mxu0 %v334_v2 }
  0x24   :  { %285 = vmatpush3.bf16.xpose.msk.msra.mxu0 %vm367_vm1, %v283_v19 }
  0x25   :  { %286 = vmatprep.subr.bf16.mxu0 %v334_v2 }
  0x2c   :  { %289 = vmatpush3.bf16.xpose.msk.msra.mxu0 %vm367_vm1, %v287_v22 }
  0x2d   :  { %290 = vmatprep.subr.bf16.mxu0 %v334_v2 }
  0x34   :  { %293 = vmatpush3.bf16.xpose.msk.msra.mxu0 %vm367_vm1, %v291_v25 }
  0x35   :  { %294 = vmatprep.subr.bf16.mxu0 %v334_v2 }
  0x3c   :  { %297 = vmatpush3.bf16.xpose.msk.msra.mxu0 %vm367_vm1, %v295_v28 }
  0x43   :  { %264 = vmatmul.mubr.msk.f32.vlgmr.msra.gmra.mrb[0].mxu0 %vm38_vm0, %v31_v29 }
  0x85   :  { %v36_v30 = vpop.permute.xlu0 %35 }
 0x116   :  { %v156_v31 = vpop.f32.mrb[0].mxu0 }
 0x117   :  { %v157_v32 = vadd.f32 %v156_v31, %v36_v30  ;;  %v265_v33 = vpop.f32.mrb[1].mxu0 }
 0x119   :  { %v164_v34 = vand.u32 2147483647, %v157_v32  ;;  %v163_v46 = vmax.f32 %v157_v32, 0.0 }
 0x11b   :  { %v165_v35 = vsub.f32 0.0, %v164_v34 }
 0x11d   :  { %v166_v36 = vmul.f32 1.442695, %v165_v35 }
 0x11f   :  { %304 = vpow2.f32 %v166_v36 }
 0x129   :  { %v305_v37 = vpop.eup %304 }
 0x12a   :  { %v168_v38 = vadd.f32 1.0, %v305_v37  ;;  %v171_v39 = vmul.f32 -0.5, %v305_v37  ;;  %v174_v41 = vand.u32 2147483647, %v305_v37 }
 0x12c   :  { %306 = vlog2.f32 %v168_v38  ;;  %v172_v40 = vadd.f32 1.0, %v171_v39  ;;  %vm175_vm3 = vcmp.lt.f32.partialorder %v174_v41, 0.0004427343 }
 0x12d   :  { %308 = vtanh.f32 %v157_v32 }
 0x12e   :  { %v173_v45 = vmul.f32 %v305_v37, %v172_v40 }
 0x136   :  { %v307_v43 = vpop.eup %306 }
 0x137   :  { %v170_v44 = vmul.f32 0.6931472, %v307_v43  ;;  %v309_v52 = vpop.eup %308 }
 0x139   :  { %v176_v47 = vsel %vm175_vm3, %v173_v45, %v170_v44 }
 0x13a   :  { %v177_v49 = vadd.f32 %v176_v47, %v163_v46 }
 0x13c   :  { %v178_v50 = vmax.f32 %v177_v49, 1e-06 }
 0x13e   :  { %v179_v51 = vmin.f32 %v178_v50, 5.0 }
 0x140   :  { %v181_v53 = vsel %vm180_vm4, %v309_v52, %v179_v51 }
 0x141   :  { %182 = vst [vmem:[#allocation2] sm:$0xff] %v181_v53 }
 0x142   :  { %321 = shalt.err (!%p318_p4)
}
 0x143   :  { %s322_s23 = scalar_lea.hbm %s451_s3, 128 }
 0x144   :  { %p323_p5 = scmp.ne.s32.totalorder %s451_s3, %s322_s23  ;;  %p326_p6 = scmp.lt.u32.totalorder %s322_s23, %s451_s3 }
 0x146   :  { %p328_p7 = pnand %p326_p6, %p323_p5 }
 0x148   :  { %331 = shalt.err (!%p328_p7)
}
 0x149   :  { %192 = dma.vmem_to_hbm [thread:$0]  %s190_s1, 128, %s451_s3, [#allocation3]  }
 0x14a   :  { %332 = dma.done.wait [#allocation3], 128  }
 0x14b   :  { %333 = vsyncadd [#allocation3], 4294967168 }
 0x14c   :  { %196 = vsyncpa [#allocation3], 1 }

</bundles_post_ra>
